<compile_context>
chip_gen: v6e
topology: v6e:2x2x1
jax: 0.10.0
libtpu: 0.0.40
codegen_flags: <defaults>
</compile_context>

<pallas_src>
import functools

import jax
import jax.numpy as jnp
from jax.experimental import pallas as pl
from jax.experimental.pallas import tpu as pltpu

_SUB = 8      # sublane count
_LANE = 128   # lane count


def _fused_addmm_kernel(x1_ref, x2_ref, inp_ref, wt_ref, out_ref):
    # v1 = x1 @ x2                     (MXU, f32 accumulation)
    v1 = jnp.dot(x1_ref[...], x2_ref[...], preferred_element_type=jnp.float32)
    # v2 = v1 + inp                    (VPU)
    v2 = v1 + inp_ref[...]
    # out = v2 @ weight.T  == v2 @ wt  (wt already transposed wrapper-side,
    #                                   so this is a standard MXU contraction)
    out = jnp.dot(v2, wt_ref[...], preferred_element_type=jnp.float32)
    out_ref[...] = out.astype(out_ref.dtype)


def _round_up(x, m):
    return ((x + m - 1) // m) * m


@functools.partial(jax.jit, static_argnames=())
def fused_addmm(x1, x2, inp, weight):
    """out = (x1 @ x2 + inp) @ weight.T, computed in a single Pallas kernel."""
    M, K = x1.shape
    K2, N = x2.shape
    assert K == K2, (x1.shape, x2.shape)
    assert inp.shape == (M, N), inp.shape
    P, N2 = weight.shape
    assert N == N2, (weight.shape, N)

    # Pad to TPU-native tile sizes (sublane=8, lane=128). Zero padding keeps the
    # math exact; the valid corner is sliced back out after the kernel.
    Mp = _round_up(M, _SUB)
    Kp = _round_up(K, _LANE)
    Np = _round_up(N, _LANE)
    Pp = _round_up(P, _LANE)

    f32 = jnp.float32
    x1_p = jnp.zeros((Mp, Kp), f32).at[:M, :K].set(x1.astype(f32))
    x2_p = jnp.zeros((Kp, Np), f32).at[:K, :N].set(x2.astype(f32))
    inp_p = jnp.zeros((Mp, Np), f32).at[:M, :N].set(inp.astype(f32))
    # Pre-transpose weight (P,N) -> (N,P) so the kernel does a plain k-major dot.
    wt_p = jnp.zeros((Np, Pp), f32).at[:N, :P].set(weight.astype(f32).T)

    out_p = pl.pallas_call(
        _fused_addmm_kernel,
        out_shape=jax.ShapeDtypeStruct((Mp, Pp), f32),
        in_specs=[
            pl.BlockSpec(memory_space=pltpu.MemorySpace.VMEM),
            pl.BlockSpec(memory_space=pltpu.MemorySpace.VMEM),
            pl.BlockSpec(memory_space=pltpu.MemorySpace.VMEM),
            pl.BlockSpec(memory_space=pltpu.MemorySpace.VMEM),
        ],
        out_specs=pl.BlockSpec(memory_space=pltpu.MemorySpace.VMEM),
    )(x1_p, x2_p, inp_p, wt_p)

    # Slice the valid region back out (outside the kernel).
    return out_p[:M, :P]


if __name__ == "__main__":
    key = jax.random.PRNGKey(0)
    k1, k2, k3, k4 = jax.random.split(key, 4)

    M, K, N, P = 2, 3, 6, 8
    x1 = jax.random.normal(k1, (M, K), dtype=jnp.float32)
    x2 = jax.random.normal(k2, (K, N), dtype=jnp.float32)
    inp = jax.random.normal(k3, (M, N), dtype=jnp.float32)
    weight = jax.random.normal(k4, (P, N), dtype=jnp.float32)

    out = fused_addmm(x1, x2, inp, weight)
    jax.block_until_ready(out)

    # Reference check in plain JAX.
    ref = (x1 @ x2 + inp) @ weight.T
    assert out.shape == (M, P), out.shape
    assert jnp.allclose(out, ref, atol=1e-5, rtol=1e-5), "mismatch vs reference"

    print("KERNEL_OK")
</pallas_src>

<mosaic_0001>
module attributes {stable_mosaic.version = 11 : i64} {
  func.func @_fused_addmm_kernel(%arg0: memref<8x128xf32, #tpu.memory_space<vmem>>, %arg1: memref<128x128xf32, #tpu.memory_space<vmem>>, %arg2: memref<8x128xf32, #tpu.memory_space<vmem>>, %arg3: memref<128x128xf32, #tpu.memory_space<vmem>>, %arg4: memref<8x128xf32, #tpu.memory_space<vmem>>) attributes {dimension_semantics = [], scalar_prefetch = 0 : i64, scratch_operands = 0 : i64, tpu.core_type = #tpu.core_type<tc>} {
    %c0 = arith.constant 0 : index
    %c0_0 = arith.constant 0 : index
    %0 = vector.load %arg0[%c0, %c0_0] : memref<8x128xf32, #tpu.memory_space<vmem>>, vector<8x128xf32>
    %c0_1 = arith.constant 0 : index
    %c0_2 = arith.constant 0 : index
    %1 = vector.load %arg1[%c0_1, %c0_2] : memref<128x128xf32, #tpu.memory_space<vmem>>, vector<128x128xf32>
    %cst = arith.constant dense<0.000000e+00> : vector<8x128xf32>
    %2 = tpu.matmul %0, %1, %cst {dimension_numbers = #tpu.dot_dimension_numbers<[1], [0], [0], [1], [0, 0, 1, 1], [], []>} : vector<8x128xf32>, vector<128x128xf32>, vector<8x128xf32> -> vector<8x128xf32>
    %c0_3 = arith.constant 0 : index
    %c0_4 = arith.constant 0 : index
    %3 = vector.load %arg2[%c0_3, %c0_4] : memref<8x128xf32, #tpu.memory_space<vmem>>, vector<8x128xf32>
    %4 = arith.addf %2, %3 : vector<8x128xf32>
    %c0_5 = arith.constant 0 : index
    %c0_6 = arith.constant 0 : index
    %5 = vector.load %arg3[%c0_5, %c0_6] : memref<128x128xf32, #tpu.memory_space<vmem>>, vector<128x128xf32>
    %cst_7 = arith.constant dense<0.000000e+00> : vector<8x128xf32>
    %6 = tpu.matmul %4, %5, %cst_7 {dimension_numbers = #tpu.dot_dimension_numbers<[1], [0], [0], [1], [0, 0, 1, 1], [], []>} : vector<8x128xf32>, vector<128x128xf32>, vector<8x128xf32> -> vector<8x128xf32>
    %c0_8 = arith.constant 0 : index
    %c0_9 = arith.constant 0 : index
    %7 = vector.load %arg4[%c0_8, %c0_9] : memref<8x128xf32, #tpu.memory_space<vmem>>, vector<8x128xf32>
    tpu.vector_store %arg4[%c0_8, %c0_9], %6 {strides = array<i32>} : memref<8x128xf32, #tpu.memory_space<vmem>>, vector<8x128xf32>,
    return
  }
}

</mosaic_0001>

<bundles_post_ra>
// kernel: fused_addmm.1
= control target key start
LH: loop header
LB: loop body
LE: loop exit
PB: predicated region body
PF: predicated region fallthrough
CT: control target
= control target key end

     0   :  { %v302_v0 = vmov 0.0   ;;  %vm303_vm0 = vmmov 0   ;;  %s468_s1 = inlined_call_operand.vmem [shape: f32[128,128], index: 1, kind: input, shape index: {}]   ;;  %s469_s3 = inlined_call_operand.vmem [shape: f32[128,128], index: 3, kind: input, shape index: {}]   ;;  %s470_s0 = inlined_call_operand.vmem [shape: f32[8,128], index: 0, kind: input, shape index: {}]   ;;  %s471_s2 = inlined_call_operand.vmem [shape: f32[8,128], index: 2, kind: input, shape index: {}]   ;;  %s472_s4 = inlined_call_operand.vmem [shape: f32[8,128], index: 4, kind: output, shape index: {}]  }
   0x1   :  { %230 = vmatprep.subr.mxu0 %v302_v0  ;;  %v33_v1 = vld [vmem:[%s468_s1 + $0x78] sm:$0xff]  ;;  %v32_v2 = vld [vmem:[%s468_s1 + $0x70] sm:$0xff]  ;;  %262 = vmatprep.mubr.msk.f32.mxu0 %vm303_vm0, %v302_v0  ;;  %v31_v3 = vld [vmem:[%s468_s1 + $0x68] sm:$0xff] }
   0x2   :  { %231 = vmatpush3.msra.mxu0 %v33_v1  ;;  %265 = vmatprep.subr.mxu1 %v302_v0  ;;  %v30_v4 = vld [vmem:[%s468_s1 + $0x60] sm:$0xff]  ;;  %v120_v5 = vld [vmem:[%s469_s3 + $0x78] sm:$0xff]  ;;  %v119_v7 = vld [vmem:[%s469_s3 + $0x70] sm:$0xff] }
   0x3   :  { %232 = vmatprep.subr.mxu0 %v302_v0  ;;  %297 = vmatprep.mubr.msk.f32.mxu1 %vm303_vm0, %v302_v0  ;;  %v29_v6 = vld [vmem:[%s468_s1 + $0x58] sm:$0xff]  ;;  %v118_v8 = vld [vmem:[%s469_s3 + $0x68] sm:$0xff]  ;;  %v28_v9 = vld [vmem:[%s468_s1 + $0x50] sm:$0xff] }
   0x4   :  { %233 = vmatpush3.msra.mxu0 %v32_v2  ;;  %266 = vmatpush3.msra.mxu1 %v120_v5  ;;  %v117_v10 = vld [vmem:[%s469_s3 + $0x60] sm:$0xff]  ;;  %v27_v11 = vld [vmem:[%s468_s1 + $0x48] sm:$0xff]  ;;  %v116_v12 = vld [vmem:[%s469_s3 + $0x58] sm:$0xff] }
   0x5   :  { %234 = vmatprep.subr.mxu0 %v302_v0  ;;  %267 = vmatprep.subr.mxu1 %v302_v0  ;;  %v26_v13 = vld [vmem:[%s468_s1 + $0x40] sm:$0xff]  ;;  %v115_v14 = vld [vmem:[%s469_s3 + $0x50] sm:$0xff]  ;;  %v25_v15 = vld [vmem:[%s468_s1 + $0x38] sm:$0xff] }
   0x6   :  { %235 = vmatpush3.msra.mxu0 %v31_v3  ;;  %268 = vmatpush3.msra.mxu1 %v119_v7  ;;  %v114_v16 = vld [vmem:[%s469_s3 + $0x48] sm:$0xff]  ;;  %v24_v17 = vld [vmem:[%s468_s1 + $0x30] sm:$0xff]  ;;  %v113_v18 = vld [vmem:[%s469_s3 + $0x40] sm:$0xff] }
   0x7   :  { %236 = vmatprep.subr.mxu0 %v302_v0  ;;  %269 = vmatprep.subr.mxu1 %v302_v0  ;;  %v23_v19 = vld [vmem:[%s468_s1 + $0x28] sm:$0xff]  ;;  %v112_v20 = vld [vmem:[%s469_s3 + $0x38] sm:$0xff]  ;;  %v22_v21 = vld [vmem:[%s468_s1 + $0x20] sm:$0xff] }
   0x8   :  { %237 = vmatpush3.msra.mxu0 %v30_v4  ;;  %270 = vmatpush3.msra.mxu1 %v118_v8  ;;  %v111_v22 = vld [vmem:[%s469_s3 + $0x30] sm:$0xff]  ;;  %v21_v23 = vld [vmem:[%s468_s1 + $0x18] sm:$0xff]  ;;  %v110_v24 = vld [vmem:[%s469_s3 + $0x28] sm:$0xff] }
   0x9   :  { %238 = vmatprep.subr.mxu0 %v302_v0  ;;  %271 = vmatprep.subr.mxu1 %v302_v0  ;;  %v20_v25 = vld [vmem:[%s468_s1 + $0x10] sm:$0xff]  ;;  %v109_v26 = vld [vmem:[%s469_s3 + $0x20] sm:$0xff]  ;;  %v19_v27 = vld [vmem:[%s468_s1 + $0x8] sm:$0xff] }
   0xa   :  { %239 = vmatpush3.msra.mxu0 %v29_v6  ;;  %272 = vmatpush3.msra.mxu1 %v117_v10  ;;  %v108_v28 = vld [vmem:[%s469_s3 + $0x18] sm:$0xff]  ;;  %v18_v29 = vld [vmem:[%s468_s1] sm:$0xff]  ;;  %v107_v31 = vld [vmem:[%s469_s3 + $0x10] sm:$0xff] }
   0xb   :  { %240 = vmatprep.subr.mxu0 %v302_v0  ;;  %273 = vmatprep.subr.mxu1 %v302_v0  ;;  %v17_v30 = vld [vmem:[%s470_s0] sm:$0xff]  ;;  %v106_v32 = vld [vmem:[%s469_s3 + $0x8] sm:$0xff] }
   0xc   :  { %241 = vmatpush3.msra.mxu0 %v28_v9  ;;  %274 = vmatpush3.msra.mxu1 %v116_v12  ;;  %v105_v33 = vld [vmem:[%s469_s3] sm:$0xff] }
   0xd   :  { %242 = vmatprep.subr.mxu0 %v302_v0  ;;  %275 = vmatprep.subr.mxu1 %v302_v0  ;;  %v34_v34 = vld [vmem:[%s471_s2] sm:$0xff] }
   0xe   :  { %243 = vmatpush3.msra.mxu0 %v27_v11  ;;  %276 = vmatpush3.msra.mxu1 %v115_v14 }
   0xf   :  { %244 = vmatprep.subr.mxu0 %v302_v0  ;;  %277 = vmatprep.subr.mxu1 %v302_v0 }
  0x10   :  { %245 = vmatpush3.msra.mxu0 %v26_v13  ;;  %278 = vmatpush3.msra.mxu1 %v114_v16 }
  0x11   :  { %246 = vmatprep.subr.mxu0 %v302_v0  ;;  %279 = vmatprep.subr.mxu1 %v302_v0 }
  0x12   :  { %247 = vmatpush3.msra.mxu0 %v25_v15  ;;  %280 = vmatpush3.msra.mxu1 %v113_v18 }
  0x13   :  { %248 = vmatprep.subr.mxu0 %v302_v0  ;;  %281 = vmatprep.subr.mxu1 %v302_v0 }
  0x14   :  { %249 = vmatpush3.msra.mxu0 %v24_v17  ;;  %282 = vmatpush3.msra.mxu1 %v112_v20 }
  0x15   :  { %250 = vmatprep.subr.mxu0 %v302_v0  ;;  %283 = vmatprep.subr.mxu1 %v302_v0 }
  0x16   :  { %251 = vmatpush3.msra.mxu0 %v23_v19  ;;  %284 = vmatpush3.msra.mxu1 %v111_v22 }
  0x17   :  { %252 = vmatprep.subr.mxu0 %v302_v0  ;;  %285 = vmatprep.subr.mxu1 %v302_v0 }
  0x18   :  { %253 = vmatpush3.msra.mxu0 %v22_v21  ;;  %286 = vmatpush3.msra.mxu1 %v110_v24 }
  0x19   :  { %254 = vmatprep.subr.mxu0 %v302_v0  ;;  %287 = vmatprep.subr.mxu1 %v302_v0 }
  0x1a   :  { %255 = vmatpush3.msra.mxu0 %v21_v23  ;;  %288 = vmatpush3.msra.mxu1 %v109_v26 }
  0x1b   :  { %256 = vmatprep.subr.mxu0 %v302_v0  ;;  %289 = vmatprep.subr.mxu1 %v302_v0 }
  0x1c   :  { %257 = vmatpush3.msra.mxu0 %v20_v25  ;;  %290 = vmatpush3.msra.mxu1 %v108_v28 }
  0x1d   :  { %258 = vmatprep.subr.mxu0 %v302_v0  ;;  %291 = vmatprep.subr.mxu1 %v302_v0 }
  0x1e   :  { %259 = vmatpush3.msra.mxu0 %v19_v27  ;;  %292 = vmatpush3.msra.mxu1 %v107_v31 }
  0x1f   :  { %260 = vmatprep.subr.mxu0 %v302_v0  ;;  %293 = vmatprep.subr.mxu1 %v302_v0 }
  0x20   :  { %261 = vmatpush3.msra.mxu0 %v18_v29  ;;  %294 = vmatpush3.msra.mxu1 %v106_v32 }
  0x21   :  { %263 = vmatmul.mubr.f32.vlgmr.msra.gmra.mxu0 %v17_v30  ;;  %295 = vmatprep.subr.mxu1 %v302_v0 }
  0x22   :  { %296 = vmatpush3.msra.mxu1 %v105_v33 }
  0xe1   :  { %v101_v35 = vpop.f32.mrf.mxu0 }
  0xe2   :  { %v102_v36 = vadd.f32 %v101_v35, %v34_v34 }
  0xe3   :  { %v264_v37 = vpop.f32.mrf.mxu0 }
  0xe4   :  { %298 = vmatmul.mubr.f32.vlgmr.msra.gmra.mxu1 %v102_v36 }
 0x1a4   :  { %v187_v38 = vpop.f32.mrf.mxu1 }
 0x1a5   :  { %191 = vst [vmem:[%s472_s4] sm:$0xff] %v187_v38 }
 0x1a6   :  { %v299_v39 = vpop.f32.mrf.mxu1 }

</bundles_post_ra>
